<compile_context>
chip_gen: v5e
topology: v5e:2x2
jax: 0.10.0
libtpu: 0.0.40
codegen_flags: <defaults>
</compile_context>

<pallas_src>
import jax
import jax.numpy as jnp
from jax.experimental import pallas as pl
from jax.experimental.pallas import tpu as pltpu


# -----------------------------------------------------------------------------
# Tunables / helpers
# -----------------------------------------------------------------------------
_VMEM_BUDGET = 40 << 20        # target footprint for pipelined buffers
_VMEM_LIMIT_FLOOR = 32 << 20   # comfortably below every generation's physical
_VMEM_LIMIT_CAP = 48 << 20     # stays under v7x's 64 MiB physical VMEM
_CONCAT_MAX_ROWS = 4096        # list branch: concat levels only below this


def _round_up(x, m):
    return ((x + m - 1) // m) * m


def _vmem_limit(footprint):
    return int(min(max(footprint + (4 << 20), _VMEM_LIMIT_FLOOR),
                   _VMEM_LIMIT_CAP))


def _row_tile(n, max_tm, per_row_bytes, fixed_bytes):
    """Pick a row tile: as large as possible under the VMEM budget, a multiple
    of 8, and giving >= 2 grid steps when there is enough work so the
    "parallel" row axis can be sharded across v7x's two TensorCores."""
    n8 = _round_up(max(n, 1), 8)
    tm = min(max_tm, n8)
    while tm > 8 and fixed_bytes + tm * per_row_bytes > _VMEM_BUDGET:
        tm = max(8, _round_up(tm // 2, 8))
    if tm >= n8 and n8 >= 16:          # whole input in one step: split for 2nd TC
        tm = _round_up((n8 + 1) // 2, 8)
    tiles = pl.cdiv(n, tm)
    footprint = fixed_bytes + tm * per_row_bytes
    return tm, tiles, footprint


# -----------------------------------------------------------------------------
# Kernels
# -----------------------------------------------------------------------------
def _linear_kernel(x_ref, w_ref, b_ref, o_ref):
    # o = x @ W + b : one MXU matmul, f32 accumulate, f32 bias add, tight store.
    acc = jnp.dot(x_ref[...], w_ref[...], preferred_element_type=jnp.float32)
    o_ref[...] = (acc + b_ref[...]).astype(o_ref.dtype)


def _fused_shared_x_kernel(x_ref, wc_ref, bc_ref, wb_ref, bb_ref, s_ref, d_ref):
    # ONE x tile feeds BOTH matmuls (de-duplicated x DMA stream).
    x = x_ref[...]
    s = jnp.dot(x, wc_ref[...], preferred_element_type=jnp.float32)
    s_ref[...] = (s + bc_ref[...]).astype(s_ref.dtype)
    d = jnp.dot(x, wb_ref[...], preferred_element_type=jnp.float32)
    d_ref[...] = (d + bb_ref[...]).astype(d_ref.dtype)


def _fused_dual_x_kernel(xc_ref, xr_ref, wc_ref, bc_ref, wb_ref, bb_ref,
                         s_ref, d_ref):
    # Distinct xc / xr streams, still a single launch with a shared row grid.
    s = jnp.dot(xc_ref[...], wc_ref[...], preferred_element_type=jnp.float32)
    s_ref[...] = (s + bc_ref[...]).astype(s_ref.dtype)
    d = jnp.dot(xr_ref[...], wb_ref[...], preferred_element_type=jnp.float32)
    d_ref[...] = (d + bb_ref[...]).astype(d_ref.dtype)


# -----------------------------------------------------------------------------
# pallas_call wrappers
# -----------------------------------------------------------------------------
def tiled_linear(x, w, b, out_dtype, *, max_tm):
    """(N, K) @ (K, M) + (1, M) with row tiling; tight (unpadded) output."""
    n, k = x.shape
    m = w.shape[1]
    csz = jnp.dtype(x.dtype).itemsize
    osz = jnp.dtype(out_dtype).itemsize
    per_row = 2 * k * csz + 2 * m * osz            # x tile + out tile (dbl-buf)
    fixed = 2 * k * m * csz + 2 * m * 4            # resident W + f32 bias
    tm, tiles, fp = _row_tile(n, max_tm, per_row, fixed)
    return pl.pallas_call(
        _linear_kernel,
        out_shape=jax.ShapeDtypeStruct((n, m), out_dtype),
        grid=(tiles,),
        in_specs=[
            pl.BlockSpec((tm, k), lambda i: (i, 0)),   # x: row-tiled, pipelined
            pl.BlockSpec((k, m), lambda i: (0, 0)),    # W: resident
            pl.BlockSpec((1, m), lambda i: (0, 0)),    # b (f32): resident
        ],
        out_specs=pl.BlockSpec((tm, m), lambda i: (i, 0)),
        compiler_params=pltpu.CompilerParams(
            dimension_semantics=("parallel",),
            vmem_limit_bytes=_vmem_limit(fp)),
    )(x, w, b)


def fused_predict_shared(x, wc, bc, wb, bb, out_dtype, *, max_tm):
    """Scores and bbox deltas from ONE shared x stream (canonical FPN case)."""
    n, k = x.shape
    mc, mb = wc.shape[1], wb.shape[1]
    csz = jnp.dtype(x.dtype).itemsize
    osz = jnp.dtype(out_dtype).itemsize
    per_row = 2 * k * csz + 2 * (mc + mb) * osz
    fixed = 2 * k * (mc + mb) * csz + 2 * (mc + mb) * 4
    tm, tiles, fp = _row_tile(n, max_tm, per_row, fixed)
    return pl.pallas_call(
        _fused_shared_x_kernel,
        out_shape=(jax.ShapeDtypeStruct((n, mc), out_dtype),
                   jax.ShapeDtypeStruct((n, mb), out_dtype)),
        grid=(tiles,),
        in_specs=[
            pl.BlockSpec((tm, k), lambda i: (i, 0)),   # x: loaded ONCE per tile
            pl.BlockSpec((k, mc), lambda i: (0, 0)),   # W_cls (folded): resident
            pl.BlockSpec((1, mc), lambda i: (0, 0)),   # b_cls (f32): resident
            pl.BlockSpec((k, mb), lambda i: (0, 0)),   # W_box (pre-tiled): resident
            pl.BlockSpec((1, mb), lambda i: (0, 0)),   # b_box (f32): resident
        ],
        out_specs=(pl.BlockSpec((tm, mc), lambda i: (i, 0)),
                   pl.BlockSpec((tm, mb), lambda i: (i, 0))),
        compiler_params=pltpu.CompilerParams(
            dimension_semantics=("parallel",),
            vmem_limit_bytes=_vmem_limit(fp)),
    )(x, wc, bc, wb, bb)


def fused_predict_dual(xc, xr, wc, bc, wb, bb, out_dtype, *, max_tm):
    """Same as above but for genuinely distinct xc / xr of equal length."""
    n, k = xc.shape
    mc, mb = wc.shape[1], wb.shape[1]
    csz = jnp.dtype(xc.dtype).itemsize
    osz = jnp.dtype(out_dtype).itemsize
    per_row = 4 * k * csz + 2 * (mc + mb) * osz
    fixed = 2 * k * (mc + mb) * csz + 2 * (mc + mb) * 4
    tm, tiles, fp = _row_tile(n, max_tm, per_row, fixed)
    return pl.pallas_call(
        _fused_dual_x_kernel,
        out_shape=(jax.ShapeDtypeStruct((n, mc), out_dtype),
                   jax.ShapeDtypeStruct((n, mb), out_dtype)),
        grid=(tiles,),
        in_specs=[
            pl.BlockSpec((tm, k), lambda i: (i, 0)),   # xc: row-tiled
            pl.BlockSpec((tm, k), lambda i: (i, 0)),   # xr: row-tiled
            pl.BlockSpec((k, mc), lambda i: (0, 0)),
            pl.BlockSpec((1, mc), lambda i: (0, 0)),
            pl.BlockSpec((k, mb), lambda i: (0, 0)),
            pl.BlockSpec((1, mb), lambda i: (0, 0)),
        ],
        out_specs=(pl.BlockSpec((tm, mc), lambda i: (i, 0)),
                   pl.BlockSpec((tm, mb), lambda i: (i, 0))),
        compiler_params=pltpu.CompilerParams(
            dimension_semantics=("parallel",),
            vmem_limit_bytes=_vmem_limit(fp)),
    )(xc, xr, wc, bc, wb, bb)


# -----------------------------------------------------------------------------
# Module
# -----------------------------------------------------------------------------
class FPNPredictor2:
    """JAX/Pallas port of the PyTorch FPNPredictor2 module.

    Production note: pass compute_dtype=jnp.bfloat16 and (ideally) feed bf16
    features produced by the preceding FC head inside the SAME jit region --
    the kernel is HBM-bandwidth bound, so halving x bytes is most of the win
    and a standalone f32->bf16 cast would give it back as an extra HBM pass.
    """

    def __init__(self, in_channels, num_classes, num_classes2,
                 cls_agnostic_bbox_reg=False, key=None, dtype=jnp.float32,
                 compute_dtype=None, out_dtype=None, max_tm=None):
        if key is None:
            key = jax.random.PRNGKey(0)
        rep = in_channels
        k1, k2, k3, k4 = jax.random.split(key, 4)

        # Raw parameters, nn.Linear layout (out_features, in_features).
        bound1 = float(rep) ** -0.5
        self.w1 = jax.random.uniform(k1, (num_classes, rep), dtype,
                                     minval=-bound1, maxval=bound1)
        self.b1 = jax.random.uniform(k2, (num_classes,), dtype,
                                     minval=-bound1, maxval=bound1)
        # cls_score2: weight ~ N(0, 0.01), bias 0
        self.w2 = (0.01 * jax.random.normal(k3, (num_classes2, num_classes))
                   ).astype(dtype)
        self.b2 = jnp.zeros((num_classes2,), dtype)
        # bbox_pred: weight ~ N(0, 0.001), bias 0
        self.wb = (0.001 * jax.random.normal(k4, (4, rep))).astype(dtype)
        self.bb = jnp.zeros((4,), dtype)

        self.num_classes2 = num_classes2
        self.num_bbox_reg_classes = 2 if cls_agnostic_bbox_reg else num_classes2
        C = self.num_bbox_reg_classes

        self.out_dtype = out_dtype if out_dtype is not None else dtype
        self.compute_dtype = jnp.dtype(
            compute_dtype if compute_dtype is not None else dtype)
        if max_tm is None:
            max_tm = 1024 if self.compute_dtype.itemsize <= 2 else 512
        self.max_tm = max_tm

        # ---- fold cls_score o cls_score2 into a single Linear (f32 fold) ----
        w_cls = self.w1.T.astype(jnp.float32) @ self.w2.T.astype(jnp.float32)
        b_cls = (self.b1.astype(jnp.float32) @ self.w2.T.astype(jnp.float32)
                 + self.b2.astype(jnp.float32))

        # ---- pre-tile bbox weight/bias (replaces in-kernel .repeat) ----
        w_box = jnp.tile(self.wb.T.astype(jnp.float32), (1, C))
        b_box = jnp.tile(self.bb.astype(jnp.float32), (C,))

        # ---- zero-pad the contraction dim K to a multiple of 128 ----
        self.rep = rep
        self.k_pad = _round_up(rep, 128)
        kp = self.k_pad - rep
        if kp:
            w_cls = jnp.pad(w_cls, ((0, kp), (0, 0)))
            w_box = jnp.pad(w_box, ((0, kp), (0, 0)))

        # Weights in the compute dtype; biases stay f32 (added after the f32
        # MXU accumulate).  Outputs are stored TIGHT -> no post-kernel slice.
        # TODO(synk): if K * (mc + mb) * itemsize ever exceeds the VMEM budget
        # (many thousands of classes) the output-column dim needs tiling too.
        self._w_cls = w_cls.astype(self.compute_dtype)
        self._w_box = w_box.astype(self.compute_dtype)
        self._b_cls = b_cls.reshape(1, -1)
        self._b_box = b_box.reshape(1, -1)

    def _prep_x(self, x):
        # Cast + zero-pad K.  In production feed compute_dtype features from
        # upstream inside the same jit region so this is not a standalone pass.
        if x.dtype != self.compute_dtype:
            x = x.astype(self.compute_dtype)
        kp = self.k_pad - x.shape[1]
        if kp:
            x = jnp.pad(x, ((0, 0), (0, kp)))
        return x

    def __call__(self, xc, xr=None):
        if xr is not None:
            if xr is xc:
                # Canonical case: both heads read the same features ->
                # single x DMA stream, two matmuls, one launch.
                scores, deltas = fused_predict_shared(
                    self._prep_x(xc), self._w_cls, self._b_cls,
                    self._w_box, self._b_box, self.out_dtype,
                    max_tm=self.max_tm)
            elif xc.shape[0] == xr.shape[0]:
                scores, deltas = fused_predict_dual(
                    self._prep_x(xc), self._prep_x(xr),
                    self._w_cls, self._b_cls, self._w_box, self._b_box,
                    self.out_dtype, max_tm=self.max_tm)
            else:
                scores = tiled_linear(self._prep_x(xc), self._w_cls,
                                      self._b_cls, self.out_dtype,
                                      max_tm=self.max_tm)
                deltas = tiled_linear(self._prep_x(xr), self._w_box,
                                      self._b_box, self.out_dtype,
                                      max_tm=self.max_tm)
            return scores, deltas

        # List-of-levels branch: scores only.
        feats = list(xc)
        sizes = [f.shape[0] for f in feats]
        if sum(sizes) <= _CONCAT_MAX_ROWS:
            # Small levels: concat -> ONE launch -> split rows back out.
            x_all = jnp.concatenate([self._prep_x(f) for f in feats], axis=0)
            s = tiled_linear(x_all, self._w_cls, self._b_cls, self.out_dtype,
                             max_tm=self.max_tm)
            outs, off = [], 0
            for sz in sizes:
                outs.append(s[off:off + sz])
                off += sz
            return outs
        # Large levels: per-level launches (avoid a full HBM pass for concat).
        return [tiled_linear(self._prep_x(f), self._w_cls, self._b_cls,
                             self.out_dtype, max_tm=self.max_tm)
                for f in feats]


# -----------------------------------------------------------------------------
# Main
# -----------------------------------------------------------------------------
if __name__ == "__main__":
    key = jax.random.PRNGKey(0)
    k_in1, k_in2, k_params = jax.random.split(key, 3)

    # Small, forward-consistent shapes.
    N = 8                     # number of ROIs
    REP = 32                  # representation_size == in_channels
    NUM_CLASSES = 8           # cfg.MODEL.ROI_BOX_HEAD.NUM_CLASSES
    NUM_ALL_CLASSES = 12      # cfg.MODEL.ROI_BOX_HEAD.NUM_ALL_CLASSES

    x_shared = jax.random.normal(k_in1, (N, REP), jnp.float32)
    x_other = jax.random.normal(k_in2, (N, REP), jnp.float32)

    model = FPNPredictor2(REP, NUM_CLASSES, NUM_ALL_CLASSES,
                          cls_agnostic_bbox_reg=False, key=k_params)

    def ref_scores(x):
        return (x @ model.w1.T + model.b1) @ model.w2.T + model.b2

    def ref_deltas(x):
        return jnp.tile(x @ model.wb.T + model.bb,
                        (1, model.num_bbox_reg_classes))

    # --- canonical case: both heads read the SAME features (single x DMA) ---
    fwd_shared = jax.jit(lambda x: model(x, x))
    s, d = fwd_shared(x_shared)
    s, d = jax.block_until_ready(s), jax.block_until_ready(d)
    assert s.shape == (N, NUM_ALL_CLASSES)
    assert d.shape == (N, 4 * NUM_ALL_CLASSES)
    assert jnp.allclose(s, ref_scores(x_shared), atol=1e-4, rtol=1e-4)
    assert jnp.allclose(d, ref_deltas(x_shared), atol=1e-4, rtol=1e-4)

    # --- distinct xc / xr -> dual-stream kernel, still one launch ---
    fwd_dual = jax.jit(lambda a, b: model(a, b))
    s2, d2 = fwd_dual(x_shared, x_other)
    s2, d2 = jax.block_until_ready(s2), jax.block_until_ready(d2)
    assert jnp.allclose(s2, ref_scores(x_shared), atol=1e-4, rtol=1e-4)
    assert jnp.allclose(d2, ref_deltas(x_other), atol=1e-4, rtol=1e-4)

    # --- partial last row tile (N not a multiple of the row tile) ---
    N2 = 13
    x13 = jax.random.normal(jax.random.PRNGKey(7), (N2, REP), jnp.float32)
    s3, d3 = fwd_shared(x13)
    s3, d3 = jax.block_until_ready(s3), jax.block_until_ready(d3)
    assert s3.shape == (N2, NUM_ALL_CLASSES)
    assert bool(jnp.all(jnp.isfinite(s3))) and bool(jnp.all(jnp.isfinite(d3)))
    assert jnp.allclose(s3, ref_scores(x13), atol=1e-4, rtol=1e-4)
    assert jnp.allclose(d3, ref_deltas(x13), atol=1e-4, rtol=1e-4)

    # --- list-of-levels branch (scores only, single launch for small levels) ---
    fwd_levels = jax.jit(lambda fs: model(fs))
    outs = fwd_levels([x_shared, x_other])
    outs = [jax.block_until_ready(o) for o in outs]
    for f, o in zip([x_shared, x_other], outs):
        assert o.shape == (f.shape[0], NUM_ALL_CLASSES)
        assert jnp.allclose(o, ref_scores(f), atol=1e-4, rtol=1e-4)

    # --- bf16 compute path (recommended production setting on v5e/v6e/v7x) ---
    model_bf16 = FPNPredictor2(REP, NUM_CLASSES, NUM_ALL_CLASSES,
                               cls_agnostic_bbox_reg=False, key=k_params,
                               compute_dtype=jnp.bfloat16)
    fwd_bf16 = jax.jit(lambda x: model_bf16(x, x))
    s16, d16 = fwd_bf16(x_shared)
    s16, d16 = jax.block_until_ready(s16), jax.block_until_ready(d16)
    assert jnp.allclose(s16, ref_scores(x_shared), atol=5e-2, rtol=5e-2)
    assert jnp.allclose(d16, ref_deltas(x_shared), atol=5e-2, rtol=5e-2)

    print("KERNEL_OK")
</pallas_src>

<mosaic_0001>
module attributes {stable_mosaic.version = 11 : i64} {
  func.func @_fused_shared_x_kernel(%arg0: i32, %arg1: memref<8x128xf32, #tpu.memory_space<vmem>>, %arg2: memref<128x12xf32, #tpu.memory_space<vmem>>, %arg3: memref<1x12xf32, #tpu.memory_space<vmem>>, %arg4: memref<128x48xf32, #tpu.memory_space<vmem>>, %arg5: memref<1x48xf32, #tpu.memory_space<vmem>>, %arg6: memref<8x12xf32, #tpu.memory_space<vmem>>, %arg7: memref<8x48xf32, #tpu.memory_space<vmem>>) attributes {dimension_semantics = [#tpu.dimension_semantics<parallel>], iteration_bounds = array<i64: 1>, scalar_prefetch = 0 : i64, scratch_operands = 0 : i64, tpu.core_type = #tpu.core_type<tc>, window_params = [{transform_indices = @transform_0, window_bounds = array<i64: 8, 128>}, {pipeline_mode = #tpu.pipeline_mode<synchronous>, transform_indices = @transform_1, window_bounds = array<i64: 128, 12>}, {pipeline_mode = #tpu.pipeline_mode<synchronous>, transform_indices = @transform_2, window_bounds = array<i64: 1, 12>}, {pipeline_mode = #tpu.pipeline_mode<synchronous>, transform_indices = @transform_3, window_bounds = array<i64: 128, 48>}, {pipeline_mode = #tpu.pipeline_mode<synchronous>, transform_indices = @transform_4, window_bounds = array<i64: 1, 48>}, {transform_indices = @transform_5, window_bounds = array<i64: 8, 12>}, {transform_indices = @transform_6, window_bounds = array<i64: 8, 48>}]} {
    %c0 = arith.constant 0 : index
    %c0_0 = arith.constant 0 : index
    %0 = vector.load %arg1[%c0, %c0_0] : memref<8x128xf32, #tpu.memory_space<vmem>>, vector<8x128xf32>
    %c0_1 = arith.constant 0 : index
    %c0_2 = arith.constant 0 : index
    %1 = vector.load %arg2[%c0_1, %c0_2] : memref<128x12xf32, #tpu.memory_space<vmem>>, vector<128x12xf32>
    %cst = arith.constant dense<0.000000e+00> : vector<8x12xf32>
    %2 = tpu.matmul %0, %1, %cst {dimension_numbers = #tpu.dot_dimension_numbers<[1], [0], [0], [1], [0, 0, 1, 1], [], []>} : vector<8x128xf32>, vector<128x12xf32>, vector<8x12xf32> -> vector<8x12xf32>
    %c0_3 = arith.constant 0 : index
    %c0_4 = arith.constant 0 : index
    %3 = vector.load %arg3[%c0_3, %c0_4] : memref<1x12xf32, #tpu.memory_space<vmem>>, vector<1x12xf32>
    %4 = vector.broadcast %3 : vector<1x12xf32> to vector<8x12xf32>
    %5 = arith.addf %2, %4 : vector<8x12xf32>
    %c0_5 = arith.constant 0 : index
    %c0_6 = arith.constant 0 : index
    %6 = vector.load %arg6[%c0_5, %c0_6] : memref<8x12xf32, #tpu.memory_space<vmem>>, vector<8x12xf32>
    tpu.vector_store %arg6[%c0_5, %c0_6], %5 {strides = array<i32>} : memref<8x12xf32, #tpu.memory_space<vmem>>, vector<8x12xf32>,
    %c0_7 = arith.constant 0 : index
    %c0_8 = arith.constant 0 : index
    %7 = vector.load %arg4[%c0_7, %c0_8] : memref<128x48xf32, #tpu.memory_space<vmem>>, vector<128x48xf32>
    %cst_9 = arith.constant dense<0.000000e+00> : vector<8x48xf32>
    %8 = tpu.matmul %0, %7, %cst_9 {dimension_numbers = #tpu.dot_dimension_numbers<[1], [0], [0], [1], [0, 0, 1, 1], [], []>} : vector<8x128xf32>, vector<128x48xf32>, vector<8x48xf32> -> vector<8x48xf32>
    %c0_10 = arith.constant 0 : index
    %c0_11 = arith.constant 0 : index
    %9 = vector.load %arg5[%c0_10, %c0_11] : memref<1x48xf32, #tpu.memory_space<vmem>>, vector<1x48xf32>
    %10 = vector.broadcast %9 : vector<1x48xf32> to vector<8x48xf32>
    %11 = arith.addf %8, %10 : vector<8x48xf32>
    %c0_12 = arith.constant 0 : index
    %c0_13 = arith.constant 0 : index
    %12 = vector.load %arg7[%c0_12, %c0_13] : memref<8x48xf32, #tpu.memory_space<vmem>>, vector<8x48xf32>
    tpu.vector_store %arg7[%c0_12, %c0_13], %11 {strides = array<i32>} : memref<8x48xf32, #tpu.memory_space<vmem>>, vector<8x48xf32>,
    return
  }
  func.func @transform_0(%arg0: i32) -> (i32, i32) {
    %c0_i32 = arith.constant 0 : i32
    %c0_i32_0 = arith.constant 0 : i32
    return %arg0, %c0_i32 : i32, i32
  }
  func.func @transform_1(%arg0: i32) -> (i32, i32) {
    %c0_i32 = arith.constant 0 : i32
    %c0_i32_0 = arith.constant 0 : i32
    %c0_i32_1 = arith.constant 0 : i32
    return %c0_i32, %c0_i32_0 : i32, i32
  }
  func.func @transform_2(%arg0: i32) -> (i32, i32) {
    %c0_i32 = arith.constant 0 : i32
    %c0_i32_0 = arith.constant 0 : i32
    %c0_i32_1 = arith.constant 0 : i32
    return %c0_i32, %c0_i32_0 : i32, i32
  }
  func.func @transform_3(%arg0: i32) -> (i32, i32) {
    %c0_i32 = arith.constant 0 : i32
    %c0_i32_0 = arith.constant 0 : i32
    %c0_i32_1 = arith.constant 0 : i32
    return %c0_i32, %c0_i32_0 : i32, i32
  }
  func.func @transform_4(%arg0: i32) -> (i32, i32) {
    %c0_i32 = arith.constant 0 : i32
    %c0_i32_0 = arith.constant 0 : i32
    %c0_i32_1 = arith.constant 0 : i32
    return %c0_i32, %c0_i32_0 : i32, i32
  }
  func.func @transform_5(%arg0: i32) -> (i32, i32) {
    %c0_i32 = arith.constant 0 : i32
    %c0_i32_0 = arith.constant 0 : i32
    return %arg0, %c0_i32 : i32, i32
  }
  func.func @transform_6(%arg0: i32) -> (i32, i32) {
    %c0_i32 = arith.constant 0 : i32
    %c0_i32_0 = arith.constant 0 : i32
    return %arg0, %c0_i32 : i32, i32
  }
}

</mosaic_0001>

<bundles_post_ra>
// kernel: _lambda_.1
= control target key start
LH: loop header
LB: loop body
LE: loop exit
PB: predicated region body
PF: predicated region fallthrough
CT: control target
= control target key end

     0   :  { %12 = vsyncpa [#allocation3], 0  ;;  %s349_s0 = inlined_call_operand.vmem [shape: f32[8,128], index: 0, kind: input, shape index: {}]   ;;  %s350_s1 = inlined_call_operand.hbm [shape: f32[128,12], index: 1, kind: input, shape index: {}]   ;;  %s351_s2 = inlined_call_operand.vmem [shape: f32[1,12], index: 2, kind: input, shape index: {}]   ;;  %s352_s3 = inlined_call_operand.hbm [shape: f32[128,48], index: 3, kind: input, shape index: {}]   ;;  %s353_s4 = inlined_call_operand.vmem [shape: f32[1,48], index: 4, kind: input, shape index: {}]   ;;  %s354_s5 = inlined_call_operand.hbm [shape: f32[8,12], index: 5, kind: output, shape index: {0}]   ;;  %s355_s6 = inlined_call_operand.hbm [shape: f32[8,48], index: 6, kind: output, shape index: {1}]  }
   0x1   :  { %13 = vsyncpa [#allocation6], 0 }
   0x2   :  { %14 = vsyncpa [#allocation4], 0 }
   0x3   :  { %15 = vsyncpa [#allocation9], 0  ;;  %s22_s23 = sshll.u32 %s350_s1, 4  ;;  %s287_s24 = smov [#allocation2]   ;;  %s23_s23 = int_to_ptr.hbm [resolvable:$true] %s22_s23 }
   0x4   :  { %s24_s25 = sshll.u32 %s287_s24, 4  ;;  %s37_s28 = sshll.u32 %s352_s3, 4  ;;  %s25_s25 = int_to_ptr.vmem [resolvable:$true] %s24_s25  ;;  %s38_s28 = int_to_ptr.hbm [resolvable:$true] %s37_s28 }
   0x5   :  { %s288_s29 = smov 128   ;;  %s289_s30 = smov 8  }
   0x6   :  { %30 = dma.hbm_to_vmem [thread:$0]  %s23_s23, 2048, %s25_s25, [#allocation3], %s288_s29, %s288_s29, %s289_s30  }
   0x7   :  { %s290_s7 = smov [#allocation5]  }
   0x8   :  { %s39_s8 = sshll.u32 %s290_s7, 4  ;;  %s40_s8 = int_to_ptr.vmem [resolvable:$true] %s39_s8 }
   0x9   :  { %45 = dma.hbm_to_vmem [thread:$0]  %s38_s28, 2048, %s40_s8, [#allocation6], %s288_s29, %s288_s29, %s289_s30  }
   0xa   :  { %279 = dma.done.wait [#allocation3], 2048  }
   0xb   :  { %280 = vsyncadd [#allocation3], 4294965248 }
   0xc   :  { %281 = dma.done.wait [#allocation6], 2048  }
   0xd   :  { %282 = vsyncadd [#allocation6], 4294965248  ;;  %v72_v0 = vld [vmem:[#allocation2 + $0x78] sm:$0xff]  ;;  %v71_v2 = vld [vmem:[#allocation2 + $0x70] sm:$0xff]  ;;  %s291_s13 = smov [#allocation7]   ;;  %s148_s17 = sshll.u32 %s354_s5, 4  ;;  %s149_s17 = int_to_ptr.hbm [resolvable:$true] %s148_s17 }
   0xe   :  { %v114_v1 = vld [vmem:[#allocation5 + $0x78] sm:$0xff]  ;;  %77 = vmatpush.msra.mxu0 %v72_v0  ;;  %v113_v3 = vld [vmem:[#allocation5 + $0x70] sm:$0xff]  ;;  %v70_v4 = vld [vmem:[#allocation2 + $0x68] sm:$0xff]  ;;  %s146_s14 = sshll.u32 %s291_s13, 4  ;;  %s292_s18 = smov [#allocation8]   ;;  %vm97_vm0 = vcmask 97280   ;;  %s147_s14 = int_to_ptr.vmem [resolvable:$true] %s146_s14 }
   0xf   :  { %119 = vmatpush.msra.mxu1 %v114_v1  ;;  %v112_v5 = vld [vmem:[#allocation5 + $0x68] sm:$0xff]  ;;  %v69_v6 = vld [vmem:[#allocation2 + $0x60] sm:$0xff]  ;;  %v68_v8 = vld [vmem:[#allocation2 + $0x58] sm:$0xff]  ;;  %s159_s21 = sshll.u32 %s355_s6, 4  ;;  %vm139_vm1 = vcmask 392192   ;;  %s160_s21 = int_to_ptr.hbm [resolvable:$true] %s159_s21 }
  0x10   :  { %78 = vmatpush.msra.mxu0 %v71_v2  ;;  %v111_v7 = vld [vmem:[#allocation5 + $0x60] sm:$0xff]  ;;  %v110_v9 = vld [vmem:[#allocation5 + $0x58] sm:$0xff]  ;;  %v67_v10 = vld [vmem:[#allocation2 + $0x50] sm:$0xff] }
  0x11   :  { %120 = vmatpush.msra.mxu1 %v113_v3  ;;  %v109_v11 = vld [vmem:[#allocation5 + $0x50] sm:$0xff]  ;;  %v66_v12 = vld [vmem:[#allocation2 + $0x48] sm:$0xff]  ;;  %v65_v14 = vld [vmem:[#allocation2 + $0x40] sm:$0xff] }
  0x12   :  { %79 = vmatpush.msra.mxu0 %v70_v4  ;;  %v108_v13 = vld [vmem:[#allocation5 + $0x48] sm:$0xff]  ;;  %v107_v15 = vld [vmem:[#allocation5 + $0x40] sm:$0xff]  ;;  %v64_v16 = vld [vmem:[#allocation2 + $0x38] sm:$0xff] }
  0x13   :  { %121 = vmatpush.msra.mxu1 %v112_v5  ;;  %v106_v17 = vld [vmem:[#allocation5 + $0x38] sm:$0xff]  ;;  %v63_v18 = vld [vmem:[#allocation2 + $0x30] sm:$0xff]  ;;  %v62_v20 = vld [vmem:[#allocation2 + $0x28] sm:$0xff] }
  0x14   :  { %80 = vmatpush.msra.mxu0 %v69_v6  ;;  %v105_v19 = vld [vmem:[#allocation5 + $0x30] sm:$0xff]  ;;  %v104_v21 = vld [vmem:[#allocation5 + $0x28] sm:$0xff]  ;;  %v61_v22 = vld [vmem:[#allocation2 + $0x20] sm:$0xff] }
  0x15   :  { %122 = vmatpush.msra.mxu1 %v111_v7  ;;  %v103_v23 = vld [vmem:[#allocation5 + $0x20] sm:$0xff]  ;;  %v60_v24 = vld [vmem:[#allocation2 + $0x18] sm:$0xff]  ;;  %v59_v26 = vld [vmem:[#allocation2 + $0x10] sm:$0xff] }
  0x16   :  { %81 = vmatpush.msra.mxu0 %v68_v8  ;;  %v102_v25 = vld [vmem:[#allocation5 + $0x18] sm:$0xff]  ;;  %v101_v27 = vld [vmem:[#allocation5 + $0x10] sm:$0xff]  ;;  %v58_v28 = vld [vmem:[#allocation2 + $0x8] sm:$0xff] }
  0x17   :  { %123 = vmatpush.msra.mxu1 %v110_v9  ;;  %v100_v29 = vld [vmem:[#allocation5 + $0x8] sm:$0xff]  ;;  %v57_v30 = vld [vmem:[#allocation2] sm:$0xff] }
  0x18   :  { %82 = vmatpush.msra.mxu0 %v67_v10  ;;  %v99_v31 = vld [vmem:[#allocation5] sm:$0xff] }
  0x19   :  { %124 = vmatpush.msra.mxu1 %v109_v11  ;;  %v56_v32 = vld [vmem:[%s349_s0] sm:$0xff]  ;;  %s157_s0 = sshll.u32 %s292_s18, 4  ;;  %s158_s0 = int_to_ptr.vmem [resolvable:$true] %s157_s0 }
  0x1a   :  { %83 = vmatpush.msra.mxu0 %v66_v12  ;;  %v181_v33 = vld [vmem:[%s351_s2] ss:$0 sm:$0xff] }
  0x1b   :  { %125 = vmatpush.msra.mxu1 %v108_v13  ;;  %v182_v34 = vld [vmem:[%s353_s4] ss:$0 sm:$0xff] }
  0x1c   :  { %84 = vmatpush.msra.mxu0 %v65_v14 }
  0x1d   :  { %126 = vmatpush.msra.mxu1 %v107_v15 }
  0x1e   :  { %85 = vmatpush.msra.mxu0 %v64_v16 }
  0x1f   :  { %127 = vmatpush.msra.mxu1 %v106_v17 }
  0x20   :  { %86 = vmatpush.msra.mxu0 %v63_v18 }
  0x21   :  { %128 = vmatpush.msra.mxu1 %v105_v19 }
  0x22   :  { %87 = vmatpush.msra.mxu0 %v62_v20 }
  0x23   :  { %129 = vmatpush.msra.mxu1 %v104_v21 }
  0x24   :  { %88 = vmatpush.msra.mxu0 %v61_v22 }
  0x25   :  { %130 = vmatpush.msra.mxu1 %v103_v23 }
  0x26   :  { %89 = vmatpush.msra.mxu0 %v60_v24 }
  0x27   :  { %131 = vmatpush.msra.mxu1 %v102_v25 }
  0x28   :  { %90 = vmatpush.msra.mxu0 %v59_v26 }
  0x29   :  { %132 = vmatpush.msra.mxu1 %v101_v27 }
  0x2a   :  { %91 = vmatpush.msra.mxu0 %v58_v28 }
  0x2b   :  { %133 = vmatpush.msra.mxu1 %v100_v29 }
  0x2c   :  { %92 = vmatpush.msra.mxu0 %v57_v30 }
  0x2d   :  { %134 = vmatpush.msra.mxu1 %v99_v31  ;;  %93 = vmatmul.f32.vlgmr.msra.gmra.mxu0 %v56_v32 }
  0x2e   :  { %135 = vmatmul.f32.vlgmr.msra.gmra.mxu1 %v56_v32 }
  0xaa   :  { %v94_v35 = vpop.f32.mrf.mxu0 }
  0xab   :  { %v136_v36 = vpop.f32.mrf.mxu1  ;;  %v95_v37 = vadd.f32 %v181_v33, %v94_v35 }
  0xac   :  { %v137_v38 = vadd.f32 %v182_v34, %v136_v36 }
  0xad   :  { %98 = vst.msk [vmem:[#allocation7] sm:$0xff] %vm97_vm0, %v95_v37 }
  0xae   :  { %151 = dma.vmem_to_hbm [thread:$0]  %s147_s14, 128, %s149_s17, [#allocation4]   ;;  %140 = vst.msk [vmem:[#allocation8] sm:$0xff] %vm139_vm1, %v137_v38 }
  0xaf   :  { %162 = dma.vmem_to_hbm [thread:$0]  %s158_s0, 128, %s160_s21, [#allocation9]  }
  0xb0   :  { %283 = dma.done.wait [#allocation4], 128  }
  0xb1   :  { %284 = vsyncadd [#allocation4], 4294967168 }
  0xb2   :  { %285 = dma.done.wait [#allocation9], 128  }
  0xb3   :  { %286 = vsyncadd [#allocation9], 4294967168 }
  0xb4   :  { %171 = vsyncpa [#allocation3], 1 }
  0xb5   :  { %172 = vsyncpa [#allocation6], 1 }
  0xb6   :  { %173 = vsyncpa [#allocation4], 1 }
  0xb7   :  { %174 = vsyncpa [#allocation9], 1 }

</bundles_post_ra>
